<compile_context>
chip_gen: v5e
topology: v5e:2x2
jax: 0.10.0
libtpu: 0.0.40
codegen_flags: <defaults>
</compile_context>

<pallas_src>
import functools

import jax
import jax.numpy as jnp
import numpy as np
from jax.experimental import pallas as pl
from jax.experimental.pallas import tpu as pltpu


# ----------------------------------------------------------------------------------
# Pallas kernel: one grid step == one tile of TB batch elements.
# ----------------------------------------------------------------------------------
def memnet_kernel(mem_ref, asp_ref, sk_ref, keep_ref,
                  wx_ref, bx_ref,          # x_linear               (D,D), (1,D)
                  wqw2_ref,                # wq @ w2^T              (D,1)
                  wkp_ref, bkp_ref,        # wk @ wp, bk@wp + bp    (D,D), (1,D)
                  wd_ref, bd_ref,          # dense (lane-padded)    (D,CP), (1,CP)
                  out_ref, *, hops):
    mem = mem_ref[...]                 # (TB, S, D)  zero-padded memory
    sk = sk_ref[...]                   # (TB, S)     folded key score (+ scalar biases)
    keep = keep_ref[...]               # (TB, S)     1.0 inside batch-max length, else 0
    x = asp_ref[...]                   # (TB, D)     pooled aspect
    wx = wx_ref[...]
    bx = bx_ref[...]
    wqw2 = wqw2_ref[...]               # (D, 1)
    wkp = wkp_ref[...]
    bkp = bkp_ref[...]

    for _ in range(hops):
        # x = x_linear(x)
        x = jnp.dot(x, wx, preferred_element_type=jnp.float32) + bx           # (TB, D)
        # folded MLP-attention query score: qx @ w2^T
        sq = jnp.dot(x, wqw2, preferred_element_type=jnp.float32)             # (TB, 1)
        score = jnp.tanh(sk + sq)                                             # (TB, S)
        # softmax over memory positions (lane axis); `keep` reproduces the
        # SqueezeEmbedding truncation to the batch max length exactly.
        score = score - jnp.max(score, axis=-1, keepdims=True)
        e = jnp.exp(score) * keep
        attn = e / jnp.sum(e, axis=-1, keepdims=True)                         # (TB, S)
        # out_at = proj(attn @ kx) == (attn @ mem) @ (wk @ wp) + (bk @ wp + bp)
        ws = jnp.einsum('bqs,bsd->bqd', attn[:, None, :], mem,
                        preferred_element_type=jnp.float32)[:, 0, :]          # (TB, D)
        out_at = jnp.dot(ws, wkp, preferred_element_type=jnp.float32) + bkp   # (TB, D)
        x = out_at + x

    out_ref[...] = (jnp.dot(x, wd_ref[...], preferred_element_type=jnp.float32)
                    + bd_ref[...])                                            # (TB, CP)


# ----------------------------------------------------------------------------------
# Wrapper: JAX glue (length counts, embedding lookup standing in for BERT,
# SqueezeEmbedding masking, aspect pooling, algebraic weight folds) + pallas_call.
# Fully jit-able (static S, no host syncs).
# ----------------------------------------------------------------------------------
def memnet_forward(params, input_ids, token_type_ids, attention_mask,
                   input_t_ids, input_t_mask, segment_t_ids, *, hops, tb=8):
    del token_type_ids, attention_mask, input_t_mask, segment_t_ids  # only feed BERT
    emb = params["emb"]
    D = emb.shape[1]
    C = params["bd"].shape[1]
    B, S = input_ids.shape

    memory_len = jnp.sum((input_ids != 0).astype(jnp.int32), axis=-1)       # (B,)
    aspect_len = jnp.sum((input_t_ids != 0).astype(jnp.int32), axis=-1)     # (B,)

    # TODO(synk): BertModel not translated; deterministic embedding lookup stands in
    #             for the last encoder layer (for both memory and aspect tokens).
    enc_mem = emb[input_ids]        # (B, S,  D)
    enc_asp = emb[input_t_ids]      # (B, St, D)

    # SqueezeEmbedding: zero positions >= memory_len[b].  Instead of truncating to the
    # data-dependent batch max length, keep static S and pass a softmax keep-mask for
    # positions >= max(memory_len) -- numerically identical to truncation.
    pos = jnp.arange(S)[None, :]
    mem = enc_mem * (pos < memory_len[:, None])[..., None].astype(enc_mem.dtype)
    batch_max = jnp.max(memory_len)
    keep_row = (jnp.arange(S) < batch_max).astype(jnp.float32)              # (S,)

    # Aspect mean pooling in the wrapper (one cheap batched reduce); clamp len >= 1.
    asp_den = jnp.maximum(aspect_len, 1).astype(jnp.float32)
    aspect = jnp.sum(enc_asp, axis=1) / asp_den[:, None]                    # (B, D)

    # Algebraic folds of the MLP-attention score / output path (exact).
    wkw1 = params["wk"] @ params["w1"].T                                    # (D, 1)
    bkw1 = (params["bk"] @ params["w1"].T)[0, 0]
    wqw2 = params["wq"] @ params["w2"].T                                    # (D, 1)
    bqw2 = (params["bq"] @ params["w2"].T)[0, 0]
    sk = (mem @ wkw1)[..., 0] + (bkw1 + bqw2)                               # (B, S)
    wkp = params["wk"] @ params["wp"]                                       # (D, D)
    bkp = params["bk"] @ params["wp"] + params["bp"]                        # (1, D)

    # Lane-dense classifier: pad output dim C -> CP (multiple of 128); slice outside.
    CP = max(128, ((C + 127) // 128) * 128)
    wd = jnp.zeros((D, CP), jnp.float32).at[:, :C].set(params["wd"])
    bd = jnp.zeros((1, CP), jnp.float32).at[:, :C].set(params["bd"])

    # Batch tiling (TB should be a multiple of 8; default 8).
    TB = tb
    Bp = ((B + TB - 1) // TB) * TB
    if Bp != B:
        padb = Bp - B
        mem = jnp.pad(mem, ((0, padb), (0, 0), (0, 0)))
        aspect = jnp.pad(aspect, ((0, padb), (0, 0)))
        sk = jnp.pad(sk, ((0, padb), (0, 0)))
    keep = jnp.broadcast_to(keep_row[None, :], (Bp, S))

    kernel = functools.partial(memnet_kernel, hops=hops)
    wfull = lambda i: (0, 0)   # grid-invariant weights (constant block index => no re-DMA)

    out = pl.pallas_call(
        kernel,
        out_shape=jax.ShapeDtypeStruct((Bp, CP), jnp.float32),
        grid=(Bp // TB,),
        in_specs=[
            pl.BlockSpec((TB, S, D), lambda i: (i, 0, 0)),     # memory tile
            pl.BlockSpec((TB, D), lambda i: (i, 0)),           # pooled aspect
            pl.BlockSpec((TB, S), lambda i: (i, 0)),           # folded key score
            pl.BlockSpec((TB, S), lambda i: (i, 0)),           # softmax keep-mask
            pl.BlockSpec((D, D), wfull), pl.BlockSpec((1, D), wfull),     # x_linear
            pl.BlockSpec((D, 1), wfull),                                  # wq @ w2^T
            pl.BlockSpec((D, D), wfull), pl.BlockSpec((1, D), wfull),     # wk@wp, bias
            pl.BlockSpec((D, CP), wfull), pl.BlockSpec((1, CP), wfull),   # dense (padded)
        ],
        out_specs=pl.BlockSpec((TB, CP), lambda i: (i, 0)),
        compiler_params=pltpu.CompilerParams(dimension_semantics=("parallel",)),
    )(mem, aspect, sk, keep,
      params["wx"], params["bx"], wqw2, wkp, bkp, wd, bd)

    return out[:B, :C]


# ----------------------------------------------------------------------------------
# Pure-JAX reference (original, unfolded math) for a correctness check.
# ----------------------------------------------------------------------------------
def memnet_reference(params, input_ids, input_t_ids, *, hops):
    memory_len = jnp.sum((input_ids != 0).astype(jnp.int32), axis=-1)
    aspect_len = jnp.sum((input_t_ids != 0).astype(jnp.int32), axis=-1).astype(jnp.float32)
    enc_mem = params["emb"][input_ids]
    enc_asp = params["emb"][input_t_ids]
    max_len = int(jnp.max(memory_len))                      # host sync OK outside jit
    mem = enc_mem[:, :max_len, :]
    valid = jnp.arange(max_len)[None, :] < memory_len[:, None]
    mem = mem * valid[..., None].astype(mem.dtype)

    aspect = jnp.sum(enc_asp, axis=1) / aspect_len[:, None]
    x = aspect[:, None, :]                                  # (B, 1, D)
    kx = mem @ params["wk"] + params["bk"]                  # (B, S, D)
    for _ in range(hops):
        x = x @ params["wx"] + params["bx"]
        qx = x @ params["wq"] + params["bq"]
        sk = jnp.sum(kx * params["w1"], axis=-1)            # (B, S)
        sq = jnp.sum(qx * params["w2"], axis=-1)            # (B, 1)
        score = jnp.tanh(sk + sq)
        attn = jax.nn.softmax(score, axis=-1)
        out_at = jnp.einsum("bs,bsd->bd", attn, kx)[:, None, :]
        out_at = out_at @ params["wp"] + params["bp"]
        x = out_at + x
    x = x.reshape(x.shape[0], -1)
    return x @ params["wd"] + params["bd"]


# ----------------------------------------------------------------------------------
# Deterministic parameter init (shapes implied by __init__: embed_dim, output_dim).
# ----------------------------------------------------------------------------------
def init_params(key, vocab, embed_dim, output_dim):
    ks = jax.random.split(key, 8)

    def lin(k, din, dout):
        kw, kb = jax.random.split(k)
        w = jax.random.normal(kw, (din, dout), jnp.float32) * 0.1
        b = jax.random.normal(kb, (1, dout), jnp.float32) * 0.1
        return w, b

    p = {"emb": jax.random.normal(ks[0], (vocab, embed_dim), jnp.float32) * 0.5}
    p["wx"], p["bx"] = lin(ks[1], embed_dim, embed_dim)        # x_linear
    p["wk"], p["bk"] = lin(ks[2], embed_dim, embed_dim)        # attention.w_k
    p["wq"], p["bq"] = lin(ks[3], embed_dim, embed_dim)        # attention.w_q
    p["wp"], p["bp"] = lin(ks[4], embed_dim, embed_dim)        # attention.proj
    p["wd"], p["bd"] = lin(ks[5], embed_dim, output_dim)       # dense
    p["w1"] = jax.random.normal(ks[6], (1, embed_dim), jnp.float32) * 0.1  # mlp weight[:D]
    p["w2"] = jax.random.normal(ks[7], (1, embed_dim), jnp.float32) * 0.1  # mlp weight[D:]
    return p


if __name__ == "__main__":
    B, S, St = 16, 16, 8
    EMBED_DIM, OUTPUT_DIM, HOPS, VOCAB = 32, 3, 3, 50

    key = jax.random.PRNGKey(0)
    k_p, k_ids, k_tids, k_ml, k_al = jax.random.split(key, 5)
    params = init_params(k_p, VOCAB, EMBED_DIM, OUTPUT_DIM)

    # token ids with zero padding (per-row lengths in [1, S] / [1, St])
    mem_lens = jax.random.randint(k_ml, (B,), 1, S + 1)
    asp_lens = jax.random.randint(k_al, (B,), 1, St + 1)
    input_ids = (jax.random.randint(k_ids, (B, S), 1, VOCAB)
                 * (jnp.arange(S)[None, :] < mem_lens[:, None])).astype(jnp.int32)
    input_t_ids = (jax.random.randint(k_tids, (B, St), 1, VOCAB)
                   * (jnp.arange(St)[None, :] < asp_lens[:, None])).astype(jnp.int32)

    # BERT-side aux inputs (unused: BERT encoder substituted, see TODO above)
    token_type_ids = jnp.zeros((B, S), jnp.int32)
    attention_mask = (input_ids != 0).astype(jnp.int32)
    segment_t_ids = jnp.zeros((B, St), jnp.int32)
    input_t_mask = (input_t_ids != 0).astype(jnp.int32)

    fwd = jax.jit(functools.partial(memnet_forward, hops=HOPS, tb=8))
    logits = jax.block_until_ready(
        fwd(params, input_ids, token_type_ids, attention_mask,
            input_t_ids, input_t_mask, segment_t_ids))

    ref = memnet_reference(params, input_ids, input_t_ids, hops=HOPS)
    np.testing.assert_allclose(np.asarray(logits), np.asarray(ref), rtol=5e-4, atol=5e-4)

    print("KERNEL_OK")
</pallas_src>

<mosaic_0001>
module attributes {stable_mosaic.version = 11 : i64} {
  func.func @memnet_kernel(%arg0: i32, %arg1: memref<8x16x32xf32, #tpu.memory_space<vmem>>, %arg2: memref<8x32xf32, #tpu.memory_space<vmem>>, %arg3: memref<8x16xf32, #tpu.memory_space<vmem>>, %arg4: memref<8x16xf32, #tpu.memory_space<vmem>>, %arg5: memref<32x32xf32, #tpu.memory_space<vmem>>, %arg6: memref<1x32xf32, #tpu.memory_space<vmem>>, %arg7: memref<32x1xf32, #tpu.memory_space<vmem>>, %arg8: memref<32x32xf32, #tpu.memory_space<vmem>>, %arg9: memref<1x32xf32, #tpu.memory_space<vmem>>, %arg10: memref<32x128xf32, #tpu.memory_space<vmem>>, %arg11: memref<1x128xf32, #tpu.memory_space<vmem>>, %arg12: memref<8x128xf32, #tpu.memory_space<vmem>>) attributes {dimension_semantics = [#tpu.dimension_semantics<parallel>], iteration_bounds = array<i64: 2>, scalar_prefetch = 0 : i64, scratch_operands = 0 : i64, tpu.core_type = #tpu.core_type<tc>, window_params = [{transform_indices = @transform_0, window_bounds = array<i64: 8, 16, 32>}, {transform_indices = @transform_1, window_bounds = array<i64: 8, 32>}, {transform_indices = @transform_2, window_bounds = array<i64: 8, 16>}, {transform_indices = @transform_3, window_bounds = array<i64: 8, 16>}, {pipeline_mode = #tpu.pipeline_mode<synchronous>, transform_indices = @transform_4, window_bounds = array<i64: 32, 32>}, {pipeline_mode = #tpu.pipeline_mode<synchronous>, transform_indices = @transform_5, window_bounds = array<i64: 1, 32>}, {pipeline_mode = #tpu.pipeline_mode<synchronous>, transform_indices = @transform_6, window_bounds = array<i64: 32, 1>}, {pipeline_mode = #tpu.pipeline_mode<synchronous>, transform_indices = @transform_7, window_bounds = array<i64: 32, 32>}, {pipeline_mode = #tpu.pipeline_mode<synchronous>, transform_indices = @transform_8, window_bounds = array<i64: 1, 32>}, {pipeline_mode = #tpu.pipeline_mode<synchronous>, transform_indices = @transform_9, window_bounds = array<i64: 32, 128>}, {pipeline_mode = #tpu.pipeline_mode<synchronous>, transform_indices = @transform_10, window_bounds = array<i64: 1, 128>}, {transform_indices = @transform_11, window_bounds = array<i64: 8, 128>}]} {
    %c0 = arith.constant 0 : index
    %c0_0 = arith.constant 0 : index
    %c0_1 = arith.constant 0 : index
    %0 = vector.load %arg1[%c0, %c0_0, %c0_1] : memref<8x16x32xf32, #tpu.memory_space<vmem>>, vector<8x16x32xf32>
    %c0_2 = arith.constant 0 : index
    %c0_3 = arith.constant 0 : index
    %1 = vector.load %arg3[%c0_2, %c0_3] : memref<8x16xf32, #tpu.memory_space<vmem>>, vector<8x16xf32>
    %c0_4 = arith.constant 0 : index
    %c0_5 = arith.constant 0 : index
    %2 = vector.load %arg4[%c0_4, %c0_5] : memref<8x16xf32, #tpu.memory_space<vmem>>, vector<8x16xf32>
    %c0_6 = arith.constant 0 : index
    %c0_7 = arith.constant 0 : index
    %3 = vector.load %arg2[%c0_6, %c0_7] : memref<8x32xf32, #tpu.memory_space<vmem>>, vector<8x32xf32>
    %c0_8 = arith.constant 0 : index
    %c0_9 = arith.constant 0 : index
    %4 = vector.load %arg5[%c0_8, %c0_9] : memref<32x32xf32, #tpu.memory_space<vmem>>, vector<32x32xf32>
    %c0_10 = arith.constant 0 : index
    %c0_11 = arith.constant 0 : index
    %5 = vector.load %arg6[%c0_10, %c0_11] : memref<1x32xf32, #tpu.memory_space<vmem>>, vector<1x32xf32>
    %c0_12 = arith.constant 0 : index
    %c0_13 = arith.constant 0 : index
    %6 = vector.load %arg7[%c0_12, %c0_13] : memref<32x1xf32, #tpu.memory_space<vmem>>, vector<32x1xf32>
    %c0_14 = arith.constant 0 : index
    %c0_15 = arith.constant 0 : index
    %7 = vector.load %arg8[%c0_14, %c0_15] : memref<32x32xf32, #tpu.memory_space<vmem>>, vector<32x32xf32>
    %c0_16 = arith.constant 0 : index
    %c0_17 = arith.constant 0 : index
    %8 = vector.load %arg9[%c0_16, %c0_17] : memref<1x32xf32, #tpu.memory_space<vmem>>, vector<1x32xf32>
    %cst = arith.constant dense<0.000000e+00> : vector<8x32xf32>
    %9 = tpu.matmul %3, %4, %cst {dimension_numbers = #tpu.dot_dimension_numbers<[1], [0], [0], [1], [0, 0, 1, 1], [], []>} : vector<8x32xf32>, vector<32x32xf32>, vector<8x32xf32> -> vector<8x32xf32>
    %10 = vector.broadcast %5 : vector<1x32xf32> to vector<8x32xf32>
    %11 = arith.addf %9, %10 : vector<8x32xf32>
    %cst_18 = arith.constant dense<0.000000e+00> : vector<8x1xf32>
    %12 = tpu.matmul %11, %6, %cst_18 {dimension_numbers = #tpu.dot_dimension_numbers<[1], [0], [0], [1], [0, 0, 1, 1], [], []>} : vector<8x32xf32>, vector<32x1xf32>, vector<8x1xf32> -> vector<8x1xf32>
    %13 = vector.broadcast %12 : vector<8x1xf32> to vector<8x16xf32>
    %14 = arith.addf %1, %13 : vector<8x16xf32>
    %15 = math.tanh %14 : vector<8x16xf32>
    %cst_19 = arith.constant dense<0xFF800000> : vector<8xf32>
    %16 = vector.multi_reduction <maximumf>, %15, %cst_19 [1] : vector<8x16xf32> to vector<8xf32>
    %17 = vector.shape_cast %16 : vector<8xf32> to vector<8x1xf32>
    %18 = vector.broadcast %17 : vector<8x1xf32> to vector<8x16xf32>
    %19 = arith.subf %15, %18 : vector<8x16xf32>
    %20 = math.exp %19 : vector<8x16xf32>
    %21 = arith.mulf %20, %2 : vector<8x16xf32>
    %cst_20 = arith.constant dense<0.000000e+00> : vector<8xf32>
    %22 = vector.multi_reduction <add>, %21, %cst_20 [1] : vector<8x16xf32> to vector<8xf32>
    %23 = vector.shape_cast %22 : vector<8xf32> to vector<8x1xf32>
    %24 = vector.broadcast %23 : vector<8x1xf32> to vector<8x16xf32>
    %25 = arith.divf %21, %24 : vector<8x16xf32>
    %26 = vector.shape_cast %25 : vector<8x16xf32> to vector<8x1x16xf32>
    "tpu.trace_start"() <{level = 10 : i32, message = "bqs,bsd->bqd"}> : () -> ()
    %cst_21 = arith.constant dense<0.000000e+00> : vector<8x1x32xf32>
    %27 = tpu.matmul %26, %0, %cst_21 {dimension_numbers = #tpu.dot_dimension_numbers<[2], [1], [1], [2], [0, 0, 0, 1, 1, 2], [0], [0]>} : vector<8x1x16xf32>, vector<8x16x32xf32>, vector<8x1x32xf32> -> vector<8x1x32xf32>
    "tpu.trace_stop"() : () -> ()
    %28 = vector.shape_cast %27 : vector<8x1x32xf32> to vector<8x32xf32>
    %cst_22 = arith.constant dense<0.000000e+00> : vector<8x32xf32>
    %29 = tpu.matmul %28, %7, %cst_22 {dimension_numbers = #tpu.dot_dimension_numbers<[1], [0], [0], [1], [0, 0, 1, 1], [], []>} : vector<8x32xf32>, vector<32x32xf32>, vector<8x32xf32> -> vector<8x32xf32>
    %30 = vector.broadcast %8 : vector<1x32xf32> to vector<8x32xf32>
    %31 = arith.addf %29, %30 : vector<8x32xf32>
    %32 = arith.addf %31, %11 : vector<8x32xf32>
    %cst_23 = arith.constant dense<0.000000e+00> : vector<8x32xf32>
    %33 = tpu.matmul %32, %4, %cst_23 {dimension_numbers = #tpu.dot_dimension_numbers<[1], [0], [0], [1], [0, 0, 1, 1], [], []>} : vector<8x32xf32>, vector<32x32xf32>, vector<8x32xf32> -> vector<8x32xf32>
    %34 = vector.broadcast %5 : vector<1x32xf32> to vector<8x32xf32>
    %35 = arith.addf %33, %34 : vector<8x32xf32>
    %cst_24 = arith.constant dense<0.000000e+00> : vector<8x1xf32>
    %36 = tpu.matmul %35, %6, %cst_24 {dimension_numbers = #tpu.dot_dimension_numbers<[1], [0], [0], [1], [0, 0, 1, 1], [], []>} : vector<8x32xf32>, vector<32x1xf32>, vector<8x1xf32> -> vector<8x1xf32>
    %37 = vector.broadcast %36 : vector<8x1xf32> to vector<8x16xf32>
    %38 = arith.addf %1, %37 : vector<8x16xf32>
    %39 = math.tanh %38 : vector<8x16xf32>
    %cst_25 = arith.constant dense<0xFF800000> : vector<8xf32>
    %40 = vector.multi_reduction <maximumf>, %39, %cst_25 [1] : vector<8x16xf32> to vector<8xf32>
    %41 = vector.shape_cast %40 : vector<8xf32> to vector<8x1xf32>
    %42 = vector.broadcast %41 : vector<8x1xf32> to vector<8x16xf32>
    %43 = arith.subf %39, %42 : vector<8x16xf32>
    %44 = math.exp %43 : vector<8x16xf32>
    %45 = arith.mulf %44, %2 : vector<8x16xf32>
    %cst_26 = arith.constant dense<0.000000e+00> : vector<8xf32>
    %46 = vector.multi_reduction <add>, %45, %cst_26 [1] : vector<8x16xf32> to vector<8xf32>
    %47 = vector.shape_cast %46 : vector<8xf32> to vector<8x1xf32>
    %48 = vector.broadcast %47 : vector<8x1xf32> to vector<8x16xf32>
    %49 = arith.divf %45, %48 : vector<8x16xf32>
    %50 = vector.shape_cast %49 : vector<8x16xf32> to vector<8x1x16xf32>
    "tpu.trace_start"() <{level = 10 : i32, message = "bqs,bsd->bqd"}> : () -> ()
    %cst_27 = arith.constant dense<0.000000e+00> : vector<8x1x32xf32>
    %51 = tpu.matmul %50, %0, %cst_27 {dimension_numbers = #tpu.dot_dimension_numbers<[2], [1], [1], [2], [0, 0, 0, 1, 1, 2], [0], [0]>} : vector<8x1x16xf32>, vector<8x16x32xf32>, vector<8x1x32xf32> -> vector<8x1x32xf32>
    "tpu.trace_stop"() : () -> ()
    %52 = vector.shape_cast %51 : vector<8x1x32xf32> to vector<8x32xf32>
    %cst_28 = arith.constant dense<0.000000e+00> : vector<8x32xf32>
    %53 = tpu.matmul %52, %7, %cst_28 {dimension_numbers = #tpu.dot_dimension_numbers<[1], [0], [0], [1], [0, 0, 1, 1], [], []>} : vector<8x32xf32>, vector<32x32xf32>, vector<8x32xf32> -> vector<8x32xf32>
    %54 = vector.broadcast %8 : vector<1x32xf32> to vector<8x32xf32>
    %55 = arith.addf %53, %54 : vector<8x32xf32>
    %56 = arith.addf %55, %35 : vector<8x32xf32>
    %cst_29 = arith.constant dense<0.000000e+00> : vector<8x32xf32>
    %57 = tpu.matmul %56, %4, %cst_29 {dimension_numbers = #tpu.dot_dimension_numbers<[1], [0], [0], [1], [0, 0, 1, 1], [], []>} : vector<8x32xf32>, vector<32x32xf32>, vector<8x32xf32> -> vector<8x32xf32>
    %58 = vector.broadcast %5 : vector<1x32xf32> to vector<8x32xf32>
    %59 = arith.addf %57, %58 : vector<8x32xf32>
    %cst_30 = arith.constant dense<0.000000e+00> : vector<8x1xf32>
    %60 = tpu.matmul %59, %6, %cst_30 {dimension_numbers = #tpu.dot_dimension_numbers<[1], [0], [0], [1], [0, 0, 1, 1], [], []>} : vector<8x32xf32>, vector<32x1xf32>, vector<8x1xf32> -> vector<8x1xf32>
    %61 = vector.broadcast %60 : vector<8x1xf32> to vector<8x16xf32>
    %62 = arith.addf %1, %61 : vector<8x16xf32>
    %63 = math.tanh %62 : vector<8x16xf32>
    %cst_31 = arith.constant dense<0xFF800000> : vector<8xf32>
    %64 = vector.multi_reduction <maximumf>, %63, %cst_31 [1] : vector<8x16xf32> to vector<8xf32>
    %65 = vector.shape_cast %64 : vector<8xf32> to vector<8x1xf32>
    %66 = vector.broadcast %65 : vector<8x1xf32> to vector<8x16xf32>
    %67 = arith.subf %63, %66 : vector<8x16xf32>
    %68 = math.exp %67 : vector<8x16xf32>
    %69 = arith.mulf %68, %2 : vector<8x16xf32>
    %cst_32 = arith.constant dense<0.000000e+00> : vector<8xf32>
    %70 = vector.multi_reduction <add>, %69, %cst_32 [1] : vector<8x16xf32> to vector<8xf32>
    %71 = vector.shape_cast %70 : vector<8xf32> to vector<8x1xf32>
    %72 = vector.broadcast %71 : vector<8x1xf32> to vector<8x16xf32>
    %73 = arith.divf %69, %72 : vector<8x16xf32>
    %74 = vector.shape_cast %73 : vector<8x16xf32> to vector<8x1x16xf32>
    "tpu.trace_start"() <{level = 10 : i32, message = "bqs,bsd->bqd"}> : () -> ()
    %cst_33 = arith.constant dense<0.000000e+00> : vector<8x1x32xf32>
    %75 = tpu.matmul %74, %0, %cst_33 {dimension_numbers = #tpu.dot_dimension_numbers<[2], [1], [1], [2], [0, 0, 0, 1, 1, 2], [0], [0]>} : vector<8x1x16xf32>, vector<8x16x32xf32>, vector<8x1x32xf32> -> vector<8x1x32xf32>
    "tpu.trace_stop"() : () -> ()
    %76 = vector.shape_cast %75 : vector<8x1x32xf32> to vector<8x32xf32>
    %cst_34 = arith.constant dense<0.000000e+00> : vector<8x32xf32>
    %77 = tpu.matmul %76, %7, %cst_34 {dimension_numbers = #tpu.dot_dimension_numbers<[1], [0], [0], [1], [0, 0, 1, 1], [], []>} : vector<8x32xf32>, vector<32x32xf32>, vector<8x32xf32> -> vector<8x32xf32>
    %78 = vector.broadcast %8 : vector<1x32xf32> to vector<8x32xf32>
    %79 = arith.addf %77, %78 : vector<8x32xf32>
    %80 = arith.addf %79, %59 : vector<8x32xf32>
    %c0_35 = arith.constant 0 : index
    %c0_36 = arith.constant 0 : index
    %81 = vector.load %arg10[%c0_35, %c0_36] : memref<32x128xf32, #tpu.memory_space<vmem>>, vector<32x128xf32>
    %cst_37 = arith.constant dense<0.000000e+00> : vector<8x128xf32>
    %82 = tpu.matmul %80, %81, %cst_37 {dimension_numbers = #tpu.dot_dimension_numbers<[1], [0], [0], [1], [0, 0, 1, 1], [], []>} : vector<8x32xf32>, vector<32x128xf32>, vector<8x128xf32> -> vector<8x128xf32>
    %c0_38 = arith.constant 0 : index
    %c0_39 = arith.constant 0 : index
    %83 = vector.load %arg11[%c0_38, %c0_39] : memref<1x128xf32, #tpu.memory_space<vmem>>, vector<1x128xf32>
    %84 = vector.broadcast %83 : vector<1x128xf32> to vector<8x128xf32>
    %85 = arith.addf %82, %84 : vector<8x128xf32>
    %c0_40 = arith.constant 0 : index
    %c0_41 = arith.constant 0 : index
    %86 = vector.load %arg12[%c0_40, %c0_41] : memref<8x128xf32, #tpu.memory_space<vmem>>, vector<8x128xf32>
    tpu.vector_store %arg12[%c0_40, %c0_41], %85 {strides = array<i32>} : memref<8x128xf32, #tpu.memory_space<vmem>>, vector<8x128xf32>,
    return
  }
  func.func @transform_0(%arg0: i32) -> (i32, i32, i32) {
    %c0_i32 = arith.constant 0 : i32
    %c0_i32_0 = arith.constant 0 : i32
    %c0_i32_1 = arith.constant 0 : i32
    return %arg0, %c0_i32, %c0_i32_0 : i32, i32, i32
  }
  func.func @transform_1(%arg0: i32) -> (i32, i32) {
    %c0_i32 = arith.constant 0 : i32
    %c0_i32_0 = arith.constant 0 : i32
    return %arg0, %c0_i32 : i32, i32
  }
  func.func @transform_2(%arg0: i32) -> (i32, i32) {
    %c0_i32 = arith.constant 0 : i32
    %c0_i32_0 = arith.constant 0 : i32
    return %arg0, %c0_i32 : i32, i32
  }
  func.func @transform_3(%arg0: i32) -> (i32, i32) {
    %c0_i32 = arith.constant 0 : i32
    %c0_i32_0 = arith.constant 0 : i32
    return %arg0, %c0_i32 : i32, i32
  }
  func.func @transform_4(%arg0: i32) -> (i32, i32) {
    %c0_i32 = arith.constant 0 : i32
    %c0_i32_0 = arith.constant 0 : i32
    %c0_i32_1 = arith.constant 0 : i32
    return %c0_i32, %c0_i32_0 : i32, i32
  }
  func.func @transform_5(%arg0: i32) -> (i32, i32) {
    %c0_i32 = arith.constant 0 : i32
    %c0_i32_0 = arith.constant 0 : i32
    %c0_i32_1 = arith.constant 0 : i32
    return %c0_i32, %c0_i32_0 : i32, i32
  }
  func.func @transform_6(%arg0: i32) -> (i32, i32) {
    %c0_i32 = arith.constant 0 : i32
    %c0_i32_0 = arith.constant 0 : i32
    %c0_i32_1 = arith.constant 0 : i32
    return %c0_i32, %c0_i32_0 : i32, i32
  }
  func.func @transform_7(%arg0: i32) -> (i32, i32) {
    %c0_i32 = arith.constant 0 : i32
    %c0_i32_0 = arith.constant 0 : i32
    %c0_i32_1 = arith.constant 0 : i32
    return %c0_i32, %c0_i32_0 : i32, i32
  }
  func.func @transform_8(%arg0: i32) -> (i32, i32) {
    %c0_i32 = arith.constant 0 : i32
    %c0_i32_0 = arith.constant 0 : i32
    %c0_i32_1 = arith.constant 0 : i32
    return %c0_i32, %c0_i32_0 : i32, i32
  }
  func.func @transform_9(%arg0: i32) -> (i32, i32) {
    %c0_i32 = arith.constant 0 : i32
    %c0_i32_0 = arith.constant 0 : i32
    %c0_i32_1 = arith.constant 0 : i32
    return %c0_i32, %c0_i32_0 : i32, i32
  }
  func.func @transform_10(%arg0: i32) -> (i32, i32) {
    %c0_i32 = arith.constant 0 : i32
    %c0_i32_0 = arith.constant 0 : i32
    %c0_i32_1 = arith.constant 0 : i32
    return %c0_i32, %c0_i32_0 : i32, i32
  }
  func.func @transform_11(%arg0: i32) -> (i32, i32) {
    %c0_i32 = arith.constant 0 : i32
    %c0_i32_0 = arith.constant 0 : i32
    return %arg0, %c0_i32 : i32, i32
  }
}

</mosaic_0001>

<bundles_post_ra>
// kernel: memnet_forward.1
= control target key start
LH: loop header
LB: loop body
LE: loop exit
PB: predicated region body
PF: predicated region fallthrough
CT: control target
= control target key end

     0   :  { %s1682_s17 = smov 0   ;;  %s2027_s0 = inlined_call_operand.vmem [shape: f32[16,16,32], index: 0, kind: input, shape index: {}]   ;;  %s2028_s1 = inlined_call_operand.vmem [shape: f32[16,32], index: 1, kind: input, shape index: {}]   ;;  %s2029_s2 = inlined_call_operand.vmem [shape: f32[16,16], index: 2, kind: input, shape index: {}]   ;;  %s2030_s3 = inlined_call_operand.vmem [shape: f32[16,16], index: 3, kind: input, shape index: {}]   ;;  %s2031_s4 = inlined_call_operand.vmem [shape: f32[32,32], index: 4, kind: input, shape index: {}]   ;;  %s2032_s5 = inlined_call_operand.vmem [shape: f32[1,32], index: 5, kind: input, shape index: {}]   ;;  %s2033_s6 = inlined_call_operand.vmem [shape: f32[32,1], index: 6, kind: input, shape index: {}]   ;;  %s2034_s7 = inlined_call_operand.vmem [shape: f32[32,32], index: 7, kind: input, shape index: {}]   ;;  %s2035_s8 = inlined_call_operand.vmem [shape: f32[1,32], index: 8, kind: input, shape index: {}]   ;;  %s2036_s9 = inlined_call_operand.vmem [shape: f32[32,128], index: 9, kind: input, shape index: {}]   ;;  %s2037_s10 = inlined_call_operand.vmem [shape: f32[1,128], index: 10, kind: input, shape index: {}]   ;;  %s2038_s11 = inlined_call_operand.vmem [shape: f32[16,128], index: 11, kind: output, shape index: {}]  }
   0x1 LB: > { %s1688_s18 = sadd.s32 4294967295, %s1619_s17   ;;  %p1535_p0 = scmp.ge.s32.totalorder %s1619_s17, 1  ;;  %s1619_s17 = sphi %s1682_s17, %s21_s17  }
   0x2   : > { %p366_p1 = scmp.lt.s32.totalorder %s1619_s17, 3 }
   0x4   : > { %p367_p2 = pnand %p1535_p0, %p366_p1 }
   0x5   : > { %p425_p3 = scmp.lt.s32.totalorder (!%p367_p2), %s1688_s18, 1  ;;  %s1536_s12 = sshll.u32 (!%p367_p2), %s1688_s18, 3 }
   0x6   : > { %370 = sbr.rel (%p367_p2) target bundleno = 2916 (0xb64), region = 64  ;;  %p419_p4 = scmp.lt.s32.totalorder (!%p367_p2), %s1536_s12, 15 }
   0xb   : > { %v1695_v0 = vld [vmem:[%s2031_s4 + $0x18] sm:$0xff]  ;;  %v1700_v1 = vld [vmem:[%s2031_s4 + $0x10] sm:$0xff]  ;;  %v1717_v4 = vld [vmem:[%s2031_s4 + $0x8] sm:$0xff]  ;;  %s426_s29 = scalar_select %p425_p3, %s1688_s18, 1  ;;  %vm477_vm0 = vcmask 261120   ;;  %v1621_v9 = vmov 0  }
   0xc   : > { %493 = vmatpush.msra.mxu0 %v1695_v0  ;;  %v1707_v2 = vld [vmem:[%s2033_s6 + $0x18] sm:$0xff]  ;;  %v1712_v3 = vld [vmem:[%s2033_s6 + $0x10] sm:$0xff]  ;;  %v1725_v5 = vld [vmem:[%s2031_s4] sm:$0xff]  ;;  %1589 = vset.pattern.permute.xlu0 %v1621_v9  ;;  %vm531_vm1 = vcmask 130048   ;;  %s2040_s12 = smov (!%p419_p4, %s1536_s12), 15  ;;  %vm753_vm6 = vcmask 1041409  }
   0xd   : > { %516 = vmatpush.msra.mxu1 %v1707_v2  ;;  %s1727_s13 = sshll.u32 %s426_s29, 3  ;;  %v1740_v7 = vld [vmem:[%s2033_s6 + $0x8] sm:$0xff]  ;;  %v1746_v8 = vld [vmem:[%s2033_s6] sm:$0xff]  ;;  %1590 = vset.pattern.permute.xlu1 %v1621_v9  ;;  %s1579_s14 = sshll.u32 %s2040_s12, 4  ;;  %v1872_v61 = vld [vmem:[%s2034_s7 + $0x18] sm:$0xff]  ;;  %vm756_vm7 = vcmask 1042434  }
   0xe   : > { %494 = vmatpush.msra.mxu0 %v1700_v1  ;;  %s428_s16 = scalar_lea.vmem %s2028_s1, %s1727_s13  ;;  %1591 = vset.pattern.permute.xlu2 %v1621_v9  ;;  %v1752_v10 = vld [vmem:[%s2032_s5] ss:$0 sm:$0xff]  ;;  %s432_s27 = scalar_lea.vmem %s2029_s2, %s1727_s13  ;;  %v1878_v62 = vld [vmem:[%s2034_s7 + $0x10] sm:$0xff]  ;;  %v1884_v63 = vld [vmem:[%s2034_s7 + $0x8] sm:$0xff]  ;;  %vm759_vm8 = vcmask 1043459   ;;  %vm762_vm9 = vcmask 1044484  }
   0xf   : > { %517 = vmatpush.msra.mxu1 %v1712_v3  ;;  %v459_v6 = vld [vmem:[%s428_s16] sm:$0xff]  ;;  %s436_s30 = scalar_lea.vmem %s2030_s3, %s1727_s13  ;;  %s1779_s19 = scalar_lea.vmem %s2027_s0, %s1579_s14  ;;  %vm765_vm10 = vcmask 1045509   ;;  %vm768_vm11 = vcmask 1046534   ;;  %vm771_vm12 = vcmask 1047559  }
  0x10   : > { %495 = vmatpush.msra.mxu0 %v1717_v4  ;;  %v1763_v14 = vld [vmem:[%s432_s27] sm:$0xff]  ;;  %v1782_v26 = vld [vmem:[%s1779_s19 + $0x8] sm:$0xff]  ;;  %v1789_v28 = vld [vmem:[%s1779_s19 + $0x18] sm:$0xff]  ;;  %s440_s24 = scalar_lea.vmem %s2038_s11, %s1727_s13 }
  0x11   : > { %518 = vmatpush.msra.mxu1 %v1740_v7  ;;  %v1771_v22 = vld [vmem:[%s436_s30] sm:$0xff]  ;;  %581 = vmatpush.msra.mxu2 %v1782_v26  ;;  %v1792_v29 = vld [vmem:[%s1779_s19 + $0x48] sm:$0xff]  ;;  %v1797_v30 = vld [vmem:[%s1779_s19 + $0x58] sm:$0xff] }
  0x12   : > { %496 = vmatpush.msra.mxu0 %v1725_v5  ;;  %v1786_v27 = vld [vmem:[%s1779_s19] sm:$0xff]  ;;  %603 = vmatpush.msra.mxu3 %v1789_v28  ;;  %v1802_v31 = vld [vmem:[%s1779_s19 + $0x10] sm:$0xff]  ;;  %v1805_v32 = vld [vmem:[%s1779_s19 + $0x28] sm:$0xff] }
  0x13   : > { %1543 = vmatmul.msk.f32.vlgmr.msra.gmra.mxu0 %vm477_vm0, %v459_v6  ;;  %519 = vmatpush.msra.mxu1 %v1746_v8  ;;  %v1808_v33 = vld [vmem:[%s1779_s19 + $0x40] sm:$0xff]  ;;  %v1813_v34 = vld [vmem:[%s1779_s19 + $0x50] sm:$0xff]  ;;  %v1818_v35 = vld [vmem:[%s1779_s19 + $0x38] sm:$0xff] }
  0x14   : > { %582 = vmatpush.msra.mxu2 %v1786_v27  ;;  %669 = vmatpush.msrb.mxu0 %v1792_v29  ;;  %v1822_v36 = vld [vmem:[%s1779_s19 + $0x20] sm:$0xff]  ;;  %v1825_v37 = vld [vmem:[%s1779_s19 + $0x30] sm:$0xff]  ;;  %v1834_v50 = vld [vmem:[%s1779_s19 + $0x68] sm:$0xff] }
  0x15   : > { %691 = vmatpush.msrb.mxu1 %v1797_v30  ;;  %604 = vmatpush.msra.mxu3 %v1802_v31  ;;  %v1838_v54 = vld [vmem:[%s1779_s19 + $0x78] sm:$0xff]  ;;  %v1842_v55 = vld [vmem:[%s1779_s19 + $0x60] sm:$0xff]  ;;  %v1847_v56 = vld [vmem:[%s1779_s19 + $0x70] sm:$0xff] }
  0x16   : > { %625 = vmatpush.msrb.mxu2 %v1805_v32  ;;  %670 = vmatpush.msrb.mxu0 %v1808_v33  ;;  %v1890_v6 = vld [vmem:[%s2034_s7] sm:$0xff] }
  0x17   : > { %692 = vmatpush.msrb.mxu1 %v1813_v34  ;;  %647 = vmatpush.msrb.mxu3 %v1818_v35 }
  0x18   : > { %626 = vmatpush.msrb.mxu2 %v1822_v36  ;;  %787 = vmatpush.msra.mxu0 %v1872_v61 }
  0x19   : > { %648 = vmatpush.msrb.mxu3 %v1825_v37 }
  0x1a   : > { %788 = vmatpush.msra.mxu0 %v1878_v62 }
  0x1c   : > { %789 = vmatpush.msra.mxu0 %v1884_v63 }
  0x1e   : > { %790 = vmatpush.msra.mxu0 %v1890_v6 }
  0x90   : > { %v498_v11 = vpop.f32.mrf.mxu0 }
  0x91   : > { %v1755_v12 = vadd.f32 %v1752_v10, %v498_v11 }
  0x93   : > { %1544 = vmatmul.msk.f32.vlgmr.msra.gmra.mxu1 %vm477_vm0, %v1755_v12 }
  0x94   : > { %811 = vmatpush.msra.mxu1 %v1695_v0 }
  0x96   : > { %812 = vmatpush.msra.mxu1 %v1700_v1 }
  0x98   : > { %813 = vmatpush.msra.mxu1 %v1717_v4 }
  0x9a   : > { %814 = vmatpush.msra.mxu1 %v1725_v5 }
 0x110   : > { %v521_v13 = vpop.f32.mrf.mxu1 }
 0x111   : > { %526 = vperm.xlu0 %1589, %v521_v13  }
 0x183   : > { %v527_v15 = vpop.permute.xlu0 %526 }
 0x184   : > { %v529_v16 = vadd.f32 %v527_v15, %v1763_v14 }
 0x186   : > { %1595 = vtanh.f32 %v529_v16 }
 0x18c   : > { %v1596_v17 = vpop.eup %1595 }
 0x18d   : > { %v532_v18 = vsel %vm531_vm1, %v1596_v17, -inf }
 0x18e   : > { %533 = vmax.xlane.f32.xlu0 %v532_v18 }
 0x201   : > { %v534_v19 = vpop.xlane.xlu0 %533 }
 0x202   : > { %v535_v20 = vsub.f32 %v1596_v17, %v534_v19 }
 0x204   : > { %v536_v21 = vmul.f32 1.442695, %v535_v20 }
 0x206   : > { %1597 = vpow2.f32 %v536_v21 }
 0x20c   : > { %v1598_v23 = vpop.eup %1597 }
 0x20d   : > { %v538_v24 = vmul.f32 %v1598_v23, %v1771_v22 }
 0x20f   : > { %v539_v25 = vsel %vm531_vm1, %v538_v24, 0.0 }
 0x210   : > { %540 = vadd.xlane.f32.xlu1 %v539_v25 }
 0x283   : > { %v541_v38 = vpop.xlane.xlu1 %540 }
 0x284   : > { %1599 = vrcp.f32 %v541_v38  ;;  %v553_v42 = vand.u32 2147483648, %v541_v38  ;;  %v551_v44 = vand.u32 2147483647, %v541_v38  ;;  %vm547_vm3 = vweird.f32 %v541_v38 }
 0x286   : > { %v554_v46 = vor.u32 1.1754944e-38, %v553_v42  ;;  %vm552_vm5 = vcmp.eq.f32.partialorder %v551_v44, 8.507059e+37 }
 0x28a   : > { %v1600_v39 = vpop.eup %1599 }
 0x28b   : > { %v543_v40 = vmul.f32 %v1600_v39, %v541_v38  ;;  %vm548_vm2 = vweird.f32 %v1600_v39 }
 0x28c   : > { %vm549_vm4 = vmor %vm547_vm3, %vm548_vm2 }
 0x28d   : > { %v544_v41 = vsub.f32 1.0, %v543_v40 }
 0x28f   : > { %v545_v43 = vmul.f32 %v1600_v39, %v544_v41 }
 0x291   : > { %v546_v45 = vadd.f32 %v1600_v39, %v545_v43 }
 0x293   : > { %v550_v47 = vsel %vm549_vm4, %v1600_v39, %v546_v45 }
 0x294   : > { %v555_v48 = vsel %vm552_vm5, %v554_v46, %v550_v47  ;;  %v1908_v47 = vld [vmem:[%s2035_s8] ss:$0 sm:$0xff] }
 0x295   : > { %v556_v49 = vmul.f32 %v555_v48, %v538_v24 }
 0x297   : > { %1545 = vmatmul.msk.f32.vlgmr.msra.gmra.mxu2 %vm531_vm1, %v556_v49  ;;  %v558_v51 = vrot.slane %v556_v49, 1  ;;  %v561_v52 = vrot.slane %v556_v49, 4  ;;  %v562_v53 = vrot.slane %v556_v49, 5  ;;  %v559_v57 = vrot.slane %v556_v49, 2 }
 0x298   : > { %713 = vmatpush.msra.mxu2 %v1834_v50  ;;  %v560_v58 = vrot.slane %v556_v49, 3  ;;  %v563_v59 = vrot.slane %v556_v49, 6  ;;  %v564_v60 = vrot.slane %v556_v49, 7 }
 0x299   : > { %1546 = vmatmul.msk.f32.vlgmr.msra.gmra.mxu3 %vm531_vm1, %v558_v51  ;;  %1549 = vmatmul.msk.f32.vlgmr.msrb.gmra.mxu0 %vm531_vm1, %v561_v52 }
 0x29a   : > { %1550 = vmatmul.msk.f32.vlgmr.msrb.gmra.mxu1 %vm531_vm1, %v562_v53  ;;  %735 = vmatpush.msra.mxu3 %v1838_v54 }
 0x29b   : > { %714 = vmatpush.msra.mxu2 %v1842_v55  ;;  %942 = vmatpush.msrb.mxu1 %v1805_v32 }
 0x29c   : > { %736 = vmatpush.msra.mxu3 %v1847_v56  ;;  %920 = vmatpush.msrb.mxu0 %v1789_v28 }
 0x29d   : > { %943 = vmatpush.msrb.mxu1 %v1822_v36 }
 0x29e   : > { %921 = vmatpush.msrb.mxu0 %v1802_v31 }
 0x29f   : > { %1547 = vmatmul.msk.f32.vlgmr.msrb.gmra.mxu2 %vm531_vm1, %v559_v57 }
 0x2a0   : > { %834 = vmatpush.msrb.mxu2 %v1707_v2 }
 0x2a1   : > { %1548 = vmatmul.msk.f32.vlgmr.msrb.gmra.mxu3 %vm531_vm1, %v560_v58 }
 0x2a2   : > { %835 = vmatpush.msrb.mxu2 %v1712_v3  ;;  %898 = vmatpush.msrb.mxu3 %v1782_v26 }
 0x2a4   : > { %836 = vmatpush.msrb.mxu2 %v1740_v7  ;;  %899 = vmatpush.msrb.mxu3 %v1786_v27 }
 0x2a6   : > { %837 = vmatpush.msrb.mxu2 %v1746_v8 }
 0x2a7   : > { %1551 = vmatmul.msk.f32.vlgmr.msra.gmra.mxu2 %vm531_vm1, %v563_v59 }
 0x2a8   : > { %964 = vmatpush.msra.mxu2 %v1818_v35 }
 0x2a9   : > { %1552 = vmatmul.msk.f32.vlgmr.msra.gmra.mxu3 %vm531_vm1, %v564_v60 }
 0x2aa   : > { %965 = vmatpush.msra.mxu2 %v1825_v37  ;;  %986 = vmatpush.msra.mxu3 %v1792_v29 }
 0x2ac   : > { %987 = vmatpush.msra.mxu3 %v1808_v33 }
 0x316   : > { %v672_v17 = vpop.f32.mrf.mxu0 }
 0x317   : > { %v761_v23 = vrot.slane %v672_v17, 4  ;;  %v694_v24 = vpop.f32.mrf.mxu1 }
 0x318   : > { %v764_v39 = vrot.slane %v694_v24, 3 }
 0x31a   : > { %v584_v9 = vpop.f32.mrf.mxu2 }
 0x31c   : > { %v606_v11 = vpop.f32.mrf.mxu3 }
 0x31d   : > { %v752_v13 = vrot.slane %v606_v11, 7 }
 0x31f   : > { %v754_v18 = vsel %vm753_vm6, %v752_v13, %v584_v9 }
 0x322   : > { %v628_v15 = vpop.f32.mrf.mxu2 }
 0x323   : > { %v755_v16 = vrot.slane %v628_v15, 6 }
 0x324   : > { %v650_v19 = vpop.f32.mrf.mxu3 }
 0x325   : > { %v757_v20 = vsel %vm756_vm7, %v755_v16, %v754_v18  ;;  %v758_v21 = vrot.slane %v650_v19, 5 }
 0x327   : > { %v760_v25 = vsel %vm759_vm8, %v758_v21, %v757_v20 }
 0x328   : > { %v763_v38 = vsel %vm762_vm9, %v761_v23, %v760_v25 }
 0x329   : > { %v766_v42 = vsel %vm765_vm10, %v764_v39, %v763_v38 }
 0x32a   : > { %v716_v40 = vpop.f32.mrf.mxu2 }
 0x32b   : > { %v767_v41 = vrot.slane %v716_v40, 2 }
 0x32c   : > { %v738_v43 = vpop.f32.mrf.mxu3 }
 0x32d   : > { %v769_v44 = vsel %vm768_vm11, %v767_v41, %v766_v42  ;;  %v770_v45 = vrot.slane %v738_v43, 1 }
 0x32f   : > { %v772_v46 = vsel %vm771_vm12, %v770_v45, %v769_v44 }
 0x330   : > { %1553 = vmatmul.msk.f32.vlgmr.msra.gmra.mxu0 %vm477_vm0, %v772_v46 }
 0x331   : > { %1008 = vmatpush.msra.mxu0 %v1797_v30 }
 0x333   : > { %1009 = vmatpush.msra.mxu0 %v1813_v34 }
 0x3ad   : > { %v792_v48 = vpop.f32.mrf.mxu0 }
 0x3ae   : > { %v793_v49 = vadd.f32 %v1908_v47, %v792_v48 }
 0x3b0   : > { %v795_v51 = vadd.f32 %v793_v49, %v1755_v12 }
 0x3b2   : > { %1554 = vmatmul.msk.f32.vlgmr.msra.gmra.mxu1 %vm477_vm0, %v795_v51 }
 0x3b3   : > { %1030 = vmatpush.msra.mxu1 %v1834_v50 }
 0x3b5   : > { %1031 = vmatpush.msra.mxu1 %v1842_v55 }
 0x42f   : > { %v816_v52 = vpop.f32.mrf.mxu1 }
 0x430   : > { %v1916_v53 = vadd.f32 %v1752_v10, %v816_v52 }
 0x432   : > { %1555 = vmatmul.msk.f32.vlgmr.msrb.gmra.mxu2 %vm477_vm0, %v1916_v53 }
 0x433   : > { %1052 = vmatpush.msrb.mxu2 %v1838_v54 }
 0x435   : > { %1053 = vmatpush.msrb.mxu2 %v1847_v56 }
 0x4b5   : > { %v839_v57 = vpop.f32.mrf.mxu2 }
 0x4b6   : > { %844 = vperm.xlu1 %1590, %v839_v57  }
 0x528   : > { %v845_v12 = vpop.permute.xlu1 %844 }
 0x529   : > { %v847_v58 = vadd.f32 %v845_v12, %v1763_v14 }
 0x52b   : > { %1601 = vtanh.f32 %v847_v58 }
 0x531   : > { %v1602_v59 = vpop.eup %1601 }
 0x532   : > { %v849_v60 = vsel %vm531_vm1, %v1602_v59, -inf }
 0x533   : > { %850 = vmax.xlane.f32.xlu2 %v849_v60 }
 0x5a6   : > { %v851_v9 = vpop.xlane.xlu2 %850 }
 0x5a7   : > { %v852_v11 = vsub.f32 %v1602_v59, %v851_v9 }
 0x5a9   : > { %v853_v13 = vmul.f32 1.442695, %v852_v11 }
 0x5ab   : > { %1603 = vpow2.f32 %v853_v13 }
 0x5b1   : > { %v1604_v15 = vpop.eup %1603 }
 0x5b2   : > { %v855_v16 = vmul.f32 %v1604_v15, %v1771_v22 }
 0x5b4   : > { %v856_v17 = vsel %vm531_vm1, %v855_v16, 0.0 }
 0x5b5   : > { %857 = vadd.xlane.f32.xlu2 %v856_v17 }
 0x628   : > { %v858_v18 = vpop.xlane.xlu2 %857 }
 0x629   : > { %1605 = vrcp.f32 %v858_v18  ;;  %v870_v23 = vand.u32 2147483648, %v858_v18  ;;  %v868_v25 = vand.u32 2147483647, %v858_v18  ;;  %vm864_vm14 = vweird.f32 %v858_v18 }
 0x62b   : > { %v871_v39 = vor.u32 1.1754944e-38, %v870_v23  ;;  %vm869_vm2 = vcmp.eq.f32.partialorder %v868_v25, 8.507059e+37 }
 0x62f   : > { %v1606_v19 = vpop.eup %1605 }
 0x630   : > { %v860_v20 = vmul.f32 %v1606_v19, %v858_v18  ;;  %vm865_vm13 = vweird.f32 %v1606_v19 }
 0x631   : > { %vm866_vm15 = vmor %vm864_vm14, %vm865_vm13 }
 0x632   : > { %v861_v21 = vsub.f32 1.0, %v860_v20 }
 0x634   : > { %v862_v24 = vmul.f32 %v1606_v19, %v861_v21 }
 0x636   : > { %v863_v38 = vadd.f32 %v1606_v19, %v862_v24 }
 0x638   : > { %v867_v40 = vsel %vm866_vm15, %v1606_v19, %v863_v38 }
 0x639   : > { %v872_v41 = vsel %vm869_vm2, %v871_v39, %v867_v40 }
 0x63a   : > { %v873_v42 = vmul.f32 %v872_v41, %v855_v16 }
 0x63c   : > { %1556 = vmatmul.msk.f32.vlgmr.msrb.gmra.mxu3 %vm531_vm1, %v873_v42  ;;  %v875_v43 = vrot.slane %v873_v42, 1  ;;  %v876_v44 = vrot.slane %v873_v42, 2  ;;  %v877_v45 = vrot.slane %v873_v42, 3  ;;  %v878_v46 = vrot.slane %v873_v42, 4 }
 0x63d   : > { %1094 = vmatpush.msrb.mxu3 %v1872_v61  ;;  %v879_v48 = vrot.slane %v873_v42, 5  ;;  %v880_v49 = vrot.slane %v873_v42, 6 }
 0x63e   : > { %1557 = vmatmul.msk.f32.vlgmr.msrb.gmra.mxu0 %vm531_vm1, %v875_v43  ;;  %1558 = vmatmul.msk.f32.vlgmr.msrb.gmra.mxu1 %vm531_vm1, %v876_v44 }
 0x63f   : > { %1559 = vmatmul.msk.f32.vlgmr.msra.gmra.mxu2 %vm531_vm1, %v877_v45  ;;  %1095 = vmatpush.msrb.mxu3 %v1878_v62 }
 0x640   : > { %1118 = vmatpush.msrb.mxu0 %v1695_v0  ;;  %1141 = vmatpush.msrb.mxu1 %v1707_v2  ;;  %v881_v0 = vrot.slane %v873_v42, 7 }
 0x641   : > { %1096 = vmatpush.msrb.mxu3 %v1884_v63  ;;  %1205 = vmatpush.msra.mxu2 %v1782_v26 }
 0x642   : > { %1119 = vmatpush.msrb.mxu0 %v1700_v1  ;;  %1142 = vmatpush.msrb.mxu1 %v1712_v3 }
 0x643   : > { %1097 = vmatpush.msrb.mxu3 %v1890_v6  ;;  %1206 = vmatpush.msra.mxu2 %v1786_v27 }
 0x644   : > { %1560 = vmatmul.msk.f32.vlgmr.msra.gmra.mxu3 %vm531_vm1, %v878_v46  ;;  %1120 = vmatpush.msrb.mxu0 %v1717_v4 }
 0x645   : > { %1143 = vmatpush.msrb.mxu1 %v1740_v7  ;;  %1227 = vmatpush.msra.mxu3 %v1789_v28 }
 0x646   : > { %1561 = vmatmul.msk.f32.vlgmr.msra.gmra.mxu0 %vm531_vm1, %v879_v48  ;;  %1562 = vmatmul.msk.f32.vlgmr.msra.gmra.mxu1 %vm531_vm1, %v880_v49 }
 0x647   : > { %1563 = vmatmul.msk.f32.vlgmr.msrb.gmra.mxu2 %vm531_vm1, %v881_v0  ;;  %1121 = vmatpush.msrb.mxu0 %v1725_v5 }
 0x648   : > { %1144 = vmatpush.msrb.mxu1 %v1746_v8  ;;  %1228 = vmatpush.msra.mxu3 %v1802_v31 }
 0x649   : > { %1249 = vmatpush.msra.mxu0 %v1805_v32  ;;  %1293 = vmatpush.msrb.mxu2 %v1792_v29 }
 0x64a   : > { %1271 = vmatpush.msra.mxu1 %v1818_v35 }
 0x64b   : > { %1250 = vmatpush.msra.mxu0 %v1822_v36  ;;  %1294 = vmatpush.msrb.mxu2 %v1808_v33 }
 0x64c   : > { %1272 = vmatpush.msra.mxu1 %v1825_v37 }
 0x6bb   : > { %v923_v1 = vpop.f32.mrf.mxu0  ;;  %v945_v2 = vpop.f32.mrf.mxu1 }
 0x6bc   : > { %v1066_v5 = vrot.slane %v923_v1, 7  ;;  %v1068_v26 = vrot.slane %v945_v2, 6 }
 0x6bf   : > { %v901_v3 = vpop.f32.mrf.mxu3 }
 0x6c0   : > { %v1067_v7 = vsel %vm753_vm6, %v1066_v5, %v901_v3 }
 0x6c1   : > { %v1069_v29 = vsel %vm756_vm7, %v1068_v26, %v1067_v7 }
 0x6c2   : > { %v967_v4 = vpop.f32.mrf.mxu2 }
 0x6c3   : > { %v1070_v8 = vrot.slane %v967_v4, 5  ;;  %v1011_v27 = vpop.f32.mrf.mxu0  ;;  %v1033_v28 = vpop.f32.mrf.mxu1 }
 0x6c4   : > { %v1074_v36 = vrot.slane %v1011_v27, 3  ;;  %v1076_v37 = vrot.slane %v1033_v28, 2 }
 0x6c5   : > { %v1071_v35 = vsel %vm759_vm8, %v1070_v8, %v1069_v29 }
 0x6c7   : > { %v989_v31 = vpop.f32.mrf.mxu3 }
 0x6c8   : > { %v1072_v32 = vrot.slane %v989_v31, 4 }
 0x6ca   : > { %v1073_v33 = vsel %vm762_vm9, %v1072_v32, %v1071_v35  ;;  %v1055_v51 = vpop.f32.mrf.mxu2 }
 0x6cb   : > { %v1075_v52 = vsel %vm765_vm10, %v1074_v36, %v1073_v33  ;;  %v1078_v57 = vrot.slane %v1055_v51, 1 }
 0x6cc   : > { %v1077_v12 = vsel %vm768_vm11, %v1076_v37, %v1075_v52  ;;  %v1411_v52 = vld [vmem:[%s2036_s9 + $0x8] sm:$0xff] }
 0x6cd   : > { %v1079_v58 = vsel %vm771_vm12, %v1078_v57, %v1077_v12  ;;  %v1410_v57 = vld [vmem:[%s2036_s9] sm:$0xff] }
 0x6ce   : > { %1564 = vmatmul.msk.f32.vlgmr.msrb.gmra.mxu3 %vm477_vm0, %v1079_v58 }
 0x6cf   : > { %1315 = vmatpush.msrb.mxu3 %v1797_v30 }
 0x6d1   : > { %1316 = vmatpush.msrb.mxu3 %v1813_v34 }
 0x751   : > { %v1099_v59 = vpop.f32.mrf.mxu3 }
 0x752   : > { %v1100_v60 = vadd.f32 %v1908_v47, %v1099_v59 }
 0x754   : > { %v1102_v9 = vadd.f32 %v1100_v60, %v1916_v53  ;;  %v1594_v60 = vld [vmem:[%s2037_s10] ss:$0 sm:$0xff] }
 0x756   : > { %1565 = vmatmul.msk.f32.vlgmr.msrb.gmra.mxu0 %vm477_vm0, %v1102_v9 }
 0x757   : > { %1337 = vmatpush.msrb.mxu0 %v1834_v50 }
 0x759   : > { %1338 = vmatpush.msrb.mxu0 %v1842_v55 }
 0x7d3   : > { %v1123_v11 = vpop.f32.mrf.mxu0 }
 0x7d4   : > { %v1972_v13 = vadd.f32 %v1752_v10, %v1123_v11 }
 0x7d6   : > { %1566 = vmatmul.msk.f32.vlgmr.msrb.gmra.mxu1 %vm477_vm0, %v1972_v13 }
 0x7d7   : > { %1359 = vmatpush.msrb.mxu1 %v1838_v54 }
 0x7d9   : > { %1360 = vmatpush.msrb.mxu1 %v1847_v56 }
 0x853   : > { %v1146_v30 = vpop.f32.mrf.mxu1 }
 0x854   : > { %1151 = vperm.xlu2 %1591, %v1146_v30  }
 0x8ae   : > { %v1152_v34 = vpop.permute.xlu2 %1151 }
 0x8af   : > { %v1154_v53 = vadd.f32 %v1152_v34, %v1763_v14 }
 0x8b1   : > { %1607 = vtanh.f32 %v1154_v53 }
 0x8b7   : > { %v1608_v50 = vpop.eup %1607 }
 0x8b8   : > { %v1156_v55 = vsel %vm531_vm1, %v1608_v50, -inf }
 0x8b9   : > { %1157 = vmax.xlane.f32.xlu1 %v1156_v55 }
 0x92c   : > { %v1158_v15 = vpop.xlane.xlu1 %1157 }
 0x92d   : > { %v1159_v10 = vsub.f32 %v1608_v50, %v1158_v15 }
 0x92f   : > { %v1160_v16 = vmul.f32 1.442695, %v1159_v10 }
 0x931   : > { %1609 = vpow2.f32 %v1160_v16 }
 0x937   : > { %v1610_v17 = vpop.eup %1609 }
 0x938   : > { %v1162_v18 = vmul.f32 %v1610_v17, %v1771_v22 }
 0x93a   : > { %v1163_v54 = vsel %vm531_vm1, %v1162_v18, 0.0 }
 0x93b   : > { %1164 = vadd.xlane.f32.xlu2 %v1163_v54 }
 0x9ae   : > { %v1165_v56 = vpop.xlane.xlu2 %1164 }
 0x9af   : > { %1611 = vrcp.f32 %v1165_v56  ;;  %v1177_v21 = vand.u32 2147483648, %v1165_v56  ;;  %v1175_v24 = vand.u32 2147483647, %v1165_v56  ;;  %vm1171_vm4 = vweird.f32 %v1165_v56 }
 0x9b1   : > { %v1178_v38 = vor.u32 1.1754944e-38, %v1177_v21  ;;  %vm1176_vm13 = vcmp.eq.f32.partialorder %v1175_v24, 8.507059e+37 }
 0x9b5   : > { %v1612_v19 = vpop.eup %1611 }
 0x9b6   : > { %v1167_v20 = vmul.f32 %v1612_v19, %v1165_v56  ;;  %vm1172_vm3 = vweird.f32 %v1612_v19 }
 0x9b7   : > { %vm1173_vm5 = vmor %vm1171_vm4, %vm1172_vm3 }
 0x9b8   : > { %v1168_v14 = vsub.f32 1.0, %v1167_v20 }
 0x9ba   : > { %v1169_v23 = vmul.f32 %v1612_v19, %v1168_v14 }
 0x9bc   : > { %v1170_v25 = vadd.f32 %v1612_v19, %v1169_v23 }
 0x9be   : > { %v1174_v39 = vsel %vm1173_vm5, %v1612_v19, %v1170_v25 }
 0x9bf   : > { %v1179_v40 = vsel %vm1176_vm13, %v1178_v38, %v1174_v39 }
 0x9c0   : > { %v1180_v22 = vmul.f32 %v1179_v40, %v1162_v18 }
 0x9c2   : > { %1567 = vmatmul.msk.f32.vlgmr.msra.gmra.mxu2 %vm531_vm1, %v1180_v22  ;;  %v1182_v41 = vrot.slane %v1180_v22, 1  ;;  %v1183_v42 = vrot.slane %v1180_v22, 2  ;;  %v1184_v43 = vrot.slane %v1180_v22, 3  ;;  %v1185_v44 = vrot.slane %v1180_v22, 4 }
 0x9c3   : > { %1401 = vmatpush.msra.mxu2 %v1872_v61  ;;  %v1186_v45 = vrot.slane %v1180_v22, 5  ;;  %v1187_v46 = vrot.slane %v1180_v22, 6  ;;  %v1188_v48 = vrot.slane %v1180_v22, 7  ;;  %v1413_v61 = vld [vmem:[%s2036_s9 + $0x18] sm:$0xff] }
 0x9c4   : > { %1568 = vmatmul.msk.f32.vlgmr.msra.gmra.mxu3 %vm531_vm1, %v1182_v41  ;;  %1569 = vmatmul.msk.f32.vlgmr.msra.gmra.mxu0 %vm531_vm1, %v1183_v42 }
 0x9c5   : > { %1570 = vmatmul.msk.f32.vlgmr.msra.gmra.mxu1 %vm531_vm1, %v1184_v43  ;;  %1402 = vmatpush.msra.mxu2 %v1878_v62  ;;  %v1412_v62 = vld [vmem:[%s2036_s9 + $0x10] sm:$0xff] }
 0x9c6   : > { %1433 = vmatpush.msra.mxu3 %v1413_v61 }
 0x9c7   : > { %1403 = vmatpush.msra.mxu2 %v1884_v63 }
 0x9c8   : > { %1434 = vmatpush.msra.mxu3 %v1412_v62 }
 0x9c9   : > { %1404 = vmatpush.msra.mxu2 %v1890_v6 }
 0x9ca   : > { %1571 = vmatmul.msk.f32.vlgmr.msrb.gmra.mxu2 %vm531_vm1, %v1185_v44  ;;  %1435 = vmatpush.msra.mxu3 %v1411_v52 }
 0x9cc   : > { %1572 = vmatmul.msk.f32.vlgmr.msrb.gmra.mxu3 %vm531_vm1, %v1186_v45  ;;  %1573 = vmatmul.msk.f32.vlgmr.msrb.gmra.mxu0 %vm531_vm1, %v1187_v46 }
 0x9cd   : > { %1574 = vmatmul.msk.f32.vlgmr.msrb.gmra.mxu1 %vm531_vm1, %v1188_v48  ;;  %1436 = vmatpush.msra.mxu3 %v1410_v57 }
 0xa41   : > { %v1252_v63 = vpop.f32.mrf.mxu0 }
 0xa42   : > { %v1274_v6 = vpop.f32.mrf.mxu1  ;;  %v1375_v2 = vrot.slane %v1252_v63, 6 }
 0xa43   : > { %v1377_v5 = vrot.slane %v1274_v6, 5 }
 0xa45   : > { %v1208_v49 = vpop.f32.mrf.mxu2 }
 0xa47   : > { %v1230_v0 = vpop.f32.mrf.mxu3 }
 0xa48   : > { %v1373_v1 = vrot.slane %v1230_v0, 7 }
 0xa49   : > { %v1340_v8 = vpop.f32.mrf.mxu0 }
 0xa4a   : > { %v1374_v3 = vsel %vm753_vm6, %v1373_v1, %v1208_v49  ;;  %v1362_v27 = vpop.f32.mrf.mxu1  ;;  %v1383_v35 = vrot.slane %v1340_v8, 2 }
 0xa4b   : > { %v1376_v4 = vsel %vm756_vm7, %v1375_v2, %v1374_v3  ;;  %v1385_v36 = vrot.slane %v1362_v27, 1 }
 0xa4c   : > { %v1378_v28 = vsel %vm759_vm8, %v1377_v5, %v1376_v4 }
 0xa4d   : > { %v1296_v7 = vpop.f32.mrf.mxu2 }
 0xa4e   : > { %v1379_v26 = vrot.slane %v1296_v7, 4 }
 0xa4f   : > { %v1318_v31 = vpop.f32.mrf.mxu3 }
 0xa50   : > { %v1380_v29 = vsel %vm762_vm9, %v1379_v26, %v1378_v28  ;;  %v1381_v32 = vrot.slane %v1318_v31, 3 }
 0xa52   : > { %v1382_v37 = vsel %vm765_vm10, %v1381_v32, %v1380_v29 }
 0xa53   : > { %v1384_v33 = vsel %vm768_vm11, %v1383_v35, %v1382_v37 }
 0xa54   : > { %v1386_v51 = vsel %vm771_vm12, %v1385_v36, %v1384_v33 }
 0xa55   : > { %1575 = vmatmul.msk.f32.vlgmr.msra.gmra.mxu2 %vm477_vm0, %v1386_v51 }
 0xad8   : > { %v1406_v12 = vpop.f32.mrf.mxu2 }
 0xad9   : > { %v1407_v58 = vadd.f32 %v1908_v47, %v1406_v12 }
 0xadb   : > { %v1409_v59 = vadd.f32 %v1407_v58, %v1972_v13 }
 0xadd   : > { %1576 = vmatmul.msk.f32.vlgmr.msra.gmra.mxu3 %vm477_vm0, %v1409_v59 }
 0xb60   : > { %v1438_v9 = vpop.f32.mrf.mxu3 }
 0xb61   : > { %v1439_v11 = vadd.f32 %v1594_v60, %v1438_v9 }
 0xb63   : > { %1441 = vst [vmem:[%s440_s24] sm:$0xff] %v1439_v11 }
 0xb64 PF: > { %s21_s17 = sadd.s32 1, %s1619_s17  }
 0xb65   : > { %p18_p5 = scmp.ge.s32.totalorder %s21_s17, 4  }
 0xb67   :  { %20 = sbr.rel (!%p18_p5) target bundleno = 1 (0x1), region = 103 }

</bundles_post_ra>
